<compile_context>
chip_gen: v7x
topology: tpu7x:2x2x1
jax: 0.10.0
libtpu: 0.0.40
codegen_flags: <defaults>
</compile_context>

<pallas_src>
import jax
import jax.numpy as jnp
from jax.experimental import pallas as pl
from jax.experimental.pallas import tpu as pltpu


def _rollout_kernel(x0_ref, m_ref, kneg_ref, traj_ref, act_ref):
    """Full Euler rollout in one invocation; outputs stay in VMEM until the end.

    x0_ref:   [B, D]                initial state
    m_ref:    [T-1, D, D]           per-step closed-loop updates I + dt_i*Acl
    kneg_ref: [D, U]                negated feedback gain (-K)
    traj_ref: [T*B, D]     (out)    flat trajectory, row block t = x_t
    act_ref:  [(T-1)*B, U] (out)    flat controller evaluations
    """
    n_steps = m_ref.shape[0]                      # static
    B = x0_ref.shape[0]                           # static

    x = x0_ref[...].astype(jnp.float32)           # carried state in vregs (f32)

    # torch odeint includes x0 at t_span[0] as the first trajectory point.
    traj_ref[pl.ds(0, B), :] = x.astype(traj_ref.dtype)

    # Fully unrolled serial Euler chain: one MXU matmul per step, stores at
    # static sublane offsets (tile-aligned when B is a multiple of 8).
    for i in range(n_steps):
        x = jnp.dot(x, m_ref[i], preferred_element_type=jnp.float32)   # [B, D]
        traj_ref[pl.ds((i + 1) * B, B), :] = x.astype(traj_ref.dtype)

    # All controller evaluations in a single wide MXU matmul:
    #   actions[t] = x_t @ (-K)  for t = 0..T-2  ->  [(T-1)*B, D] x [D, U].
    xs = traj_ref[pl.ds(0, n_steps * B), :].astype(jnp.float32)
    u_all = jnp.dot(xs, kneg_ref[...], preferred_element_type=jnp.float32)
    act_ref[...] = u_all.astype(act_ref.dtype)


def controlled_system_forward(x0, t_span, A, Bm, K):
    """Pallas Euler rollout.  Returns (traj [T,B,D], actions [T-1,B,U])."""
    B_, D = x0.shape
    U = K.shape[1]
    T = int(t_span.shape[0])
    n_steps = T - 1

    # Host-side precompute (static across the rollout):
    #   closed loop:  xdot = x@A + (-x@K)@Bm = x @ (A - K@Bm) = x @ Acl
    #   Euler step:   x_{i+1} = x_i @ (I + dt_i * Acl) = x_i @ M_i
    dts = (t_span[1:] - t_span[:-1]).astype(jnp.float32)           # [T-1]
    Acl = (A - K @ Bm).astype(jnp.float32)                         # [D, D]
    M = jnp.eye(D, dtype=jnp.float32)[None] + dts[:, None, None] * Acl[None]
    Kneg = (-K).astype(jnp.float32)                                # [D, U]

    traj_flat, act_flat = pl.pallas_call(
        _rollout_kernel,
        out_shape=(jax.ShapeDtypeStruct((T * B_, D), x0.dtype),
                   jax.ShapeDtypeStruct((n_steps * B_, U), x0.dtype)),
        in_specs=[
            pl.BlockSpec(memory_space=pltpu.MemorySpace.VMEM),     # x0
            pl.BlockSpec(memory_space=pltpu.MemorySpace.VMEM),     # M [T-1,D,D]
            pl.BlockSpec(memory_space=pltpu.MemorySpace.VMEM),     # Kneg
        ],
        out_specs=(
            pl.BlockSpec(memory_space=pltpu.MemorySpace.VMEM),     # traj flat
            pl.BlockSpec(memory_space=pltpu.MemorySpace.VMEM),     # actions flat
        ),
    )(x0, M, Kneg)

    # Host-side layout plumbing only (no compute): unflatten the step axis.
    traj = traj_flat.reshape(T, B_, D)
    actions = act_flat.reshape(n_steps, B_, U)
    return traj, actions


def reference_forward(x0, t_span, A, Bm, K):
    """Pure-JAX reference matching the PyTorch module semantics."""
    dts = (t_span[1:] - t_span[:-1]).astype(jnp.float32)

    def step(x, dt):
        u = -x @ K
        f = x @ A + u @ Bm
        x_new = x + dt * f
        return x_new, (x_new, u)

    _, (xs, us) = jax.lax.scan(step, x0, dts)
    traj = jnp.concatenate([x0[None], xs], axis=0)
    return traj, us


if __name__ == "__main__":
    B_, D, U, T = 8, 32, 16, 8   # batch, state dim, control dim, time points

    key = jax.random.PRNGKey(0)
    k0, k1, k2, k3 = jax.random.split(key, 4)
    x0 = jax.random.normal(k0, (B_, D), dtype=jnp.float32)
    A = 0.1 * jax.random.normal(k1, (D, D), dtype=jnp.float32)   # system matrix
    Bm = 0.1 * jax.random.normal(k2, (U, D), dtype=jnp.float32)  # input matrix
    K = 0.1 * jax.random.normal(k3, (D, U), dtype=jnp.float32)   # feedback gain
    t_span = jnp.linspace(0.0, 1.0, T, dtype=jnp.float32)

    traj, actions = controlled_system_forward(x0, t_span, A, Bm, K)
    jax.block_until_ready((traj, actions))

    traj_ref, act_ref = reference_forward(x0, t_span, A, Bm, K)
    assert traj.shape == (T, B_, D) and actions.shape == (T - 1, B_, U)
    # Slightly looser tolerance: the kernel uses the algebraically equivalent
    # closed-loop form x @ (I + dt*(A - K@Bm)) (reassociated f32 matmuls).
    assert jnp.allclose(traj, traj_ref, atol=1e-4, rtol=1e-4)
    assert jnp.allclose(actions, act_ref, atol=1e-4, rtol=1e-4)

    print("KERNEL_OK")
</pallas_src>

<mosaic_0001>
module attributes {stable_mosaic.version = 11 : i64} {
  func.func @_rollout_kernel(%arg0: memref<8x32xf32, #tpu.memory_space<vmem>>, %arg1: memref<7x32x32xf32, #tpu.memory_space<vmem>>, %arg2: memref<32x16xf32, #tpu.memory_space<vmem>>, %arg3: memref<64x32xf32, #tpu.memory_space<vmem>>, %arg4: memref<56x16xf32, #tpu.memory_space<vmem>>) attributes {dimension_semantics = [], scalar_prefetch = 0 : i64, scratch_operands = 0 : i64, tpu.core_type = #tpu.core_type<tc>} {
    %c0 = arith.constant 0 : index
    %c0_0 = arith.constant 0 : index
    %0 = vector.load %arg0[%c0, %c0_0] : memref<8x32xf32, #tpu.memory_space<vmem>>, vector<8x32xf32>
    %c0_1 = arith.constant 0 : index
    %c0_2 = arith.constant 0 : index
    %1 = vector.load %arg3[%c0_1, %c0_2] : memref<64x32xf32, #tpu.memory_space<vmem>>, vector<8x32xf32>
    tpu.vector_store %arg3[%c0_1, %c0_2], %0 {strides = array<i32>} : memref<64x32xf32, #tpu.memory_space<vmem>>, vector<8x32xf32>,
    %c0_3 = arith.constant 0 : index
    %c0_4 = arith.constant 0 : index
    %c0_5 = arith.constant 0 : index
    %2 = vector.load %arg1[%c0_3, %c0_4, %c0_5] : memref<7x32x32xf32, #tpu.memory_space<vmem>>, vector<1x32x32xf32>
    %3 = vector.shape_cast %2 : vector<1x32x32xf32> to vector<32x32xf32>
    %cst = arith.constant dense<0.000000e+00> : vector<8x32xf32>
    %4 = tpu.matmul %0, %3, %cst {dimension_numbers = #tpu.dot_dimension_numbers<[1], [0], [0], [1], [0, 0, 1, 1], [], []>} : vector<8x32xf32>, vector<32x32xf32>, vector<8x32xf32> -> vector<8x32xf32>
    %c8 = arith.constant 8 : index
    %c0_6 = arith.constant 0 : index
    %5 = vector.load %arg3[%c8, %c0_6] : memref<64x32xf32, #tpu.memory_space<vmem>>, vector<8x32xf32>
    tpu.vector_store %arg3[%c8, %c0_6], %4 {strides = array<i32>} : memref<64x32xf32, #tpu.memory_space<vmem>>, vector<8x32xf32>,
    %c1 = arith.constant 1 : index
    %c0_7 = arith.constant 0 : index
    %c0_8 = arith.constant 0 : index
    %6 = vector.load %arg1[%c1, %c0_7, %c0_8] : memref<7x32x32xf32, #tpu.memory_space<vmem>>, vector<1x32x32xf32>
    %7 = vector.shape_cast %6 : vector<1x32x32xf32> to vector<32x32xf32>
    %cst_9 = arith.constant dense<0.000000e+00> : vector<8x32xf32>
    %8 = tpu.matmul %4, %7, %cst_9 {dimension_numbers = #tpu.dot_dimension_numbers<[1], [0], [0], [1], [0, 0, 1, 1], [], []>} : vector<8x32xf32>, vector<32x32xf32>, vector<8x32xf32> -> vector<8x32xf32>
    %c16 = arith.constant 16 : index
    %c0_10 = arith.constant 0 : index
    %9 = vector.load %arg3[%c16, %c0_10] : memref<64x32xf32, #tpu.memory_space<vmem>>, vector<8x32xf32>
    tpu.vector_store %arg3[%c16, %c0_10], %8 {strides = array<i32>} : memref<64x32xf32, #tpu.memory_space<vmem>>, vector<8x32xf32>,
    %c2 = arith.constant 2 : index
    %c0_11 = arith.constant 0 : index
    %c0_12 = arith.constant 0 : index
    %10 = vector.load %arg1[%c2, %c0_11, %c0_12] : memref<7x32x32xf32, #tpu.memory_space<vmem>>, vector<1x32x32xf32>
    %11 = vector.shape_cast %10 : vector<1x32x32xf32> to vector<32x32xf32>
    %cst_13 = arith.constant dense<0.000000e+00> : vector<8x32xf32>
    %12 = tpu.matmul %8, %11, %cst_13 {dimension_numbers = #tpu.dot_dimension_numbers<[1], [0], [0], [1], [0, 0, 1, 1], [], []>} : vector<8x32xf32>, vector<32x32xf32>, vector<8x32xf32> -> vector<8x32xf32>
    %c24 = arith.constant 24 : index
    %c0_14 = arith.constant 0 : index
    %13 = vector.load %arg3[%c24, %c0_14] : memref<64x32xf32, #tpu.memory_space<vmem>>, vector<8x32xf32>
    tpu.vector_store %arg3[%c24, %c0_14], %12 {strides = array<i32>} : memref<64x32xf32, #tpu.memory_space<vmem>>, vector<8x32xf32>,
    %c3 = arith.constant 3 : index
    %c0_15 = arith.constant 0 : index
    %c0_16 = arith.constant 0 : index
    %14 = vector.load %arg1[%c3, %c0_15, %c0_16] : memref<7x32x32xf32, #tpu.memory_space<vmem>>, vector<1x32x32xf32>
    %15 = vector.shape_cast %14 : vector<1x32x32xf32> to vector<32x32xf32>
    %cst_17 = arith.constant dense<0.000000e+00> : vector<8x32xf32>
    %16 = tpu.matmul %12, %15, %cst_17 {dimension_numbers = #tpu.dot_dimension_numbers<[1], [0], [0], [1], [0, 0, 1, 1], [], []>} : vector<8x32xf32>, vector<32x32xf32>, vector<8x32xf32> -> vector<8x32xf32>
    %c32 = arith.constant 32 : index
    %c0_18 = arith.constant 0 : index
    %17 = vector.load %arg3[%c32, %c0_18] : memref<64x32xf32, #tpu.memory_space<vmem>>, vector<8x32xf32>
    tpu.vector_store %arg3[%c32, %c0_18], %16 {strides = array<i32>} : memref<64x32xf32, #tpu.memory_space<vmem>>, vector<8x32xf32>,
    %c4 = arith.constant 4 : index
    %c0_19 = arith.constant 0 : index
    %c0_20 = arith.constant 0 : index
    %18 = vector.load %arg1[%c4, %c0_19, %c0_20] : memref<7x32x32xf32, #tpu.memory_space<vmem>>, vector<1x32x32xf32>
    %19 = vector.shape_cast %18 : vector<1x32x32xf32> to vector<32x32xf32>
    %cst_21 = arith.constant dense<0.000000e+00> : vector<8x32xf32>
    %20 = tpu.matmul %16, %19, %cst_21 {dimension_numbers = #tpu.dot_dimension_numbers<[1], [0], [0], [1], [0, 0, 1, 1], [], []>} : vector<8x32xf32>, vector<32x32xf32>, vector<8x32xf32> -> vector<8x32xf32>
    %c40 = arith.constant 40 : index
    %c0_22 = arith.constant 0 : index
    %21 = vector.load %arg3[%c40, %c0_22] : memref<64x32xf32, #tpu.memory_space<vmem>>, vector<8x32xf32>
    tpu.vector_store %arg3[%c40, %c0_22], %20 {strides = array<i32>} : memref<64x32xf32, #tpu.memory_space<vmem>>, vector<8x32xf32>,
    %c5 = arith.constant 5 : index
    %c0_23 = arith.constant 0 : index
    %c0_24 = arith.constant 0 : index
    %22 = vector.load %arg1[%c5, %c0_23, %c0_24] : memref<7x32x32xf32, #tpu.memory_space<vmem>>, vector<1x32x32xf32>
    %23 = vector.shape_cast %22 : vector<1x32x32xf32> to vector<32x32xf32>
    %cst_25 = arith.constant dense<0.000000e+00> : vector<8x32xf32>
    %24 = tpu.matmul %20, %23, %cst_25 {dimension_numbers = #tpu.dot_dimension_numbers<[1], [0], [0], [1], [0, 0, 1, 1], [], []>} : vector<8x32xf32>, vector<32x32xf32>, vector<8x32xf32> -> vector<8x32xf32>
    %c48 = arith.constant 48 : index
    %c0_26 = arith.constant 0 : index
    %25 = vector.load %arg3[%c48, %c0_26] : memref<64x32xf32, #tpu.memory_space<vmem>>, vector<8x32xf32>
    tpu.vector_store %arg3[%c48, %c0_26], %24 {strides = array<i32>} : memref<64x32xf32, #tpu.memory_space<vmem>>, vector<8x32xf32>,
    %c6 = arith.constant 6 : index
    %c0_27 = arith.constant 0 : index
    %c0_28 = arith.constant 0 : index
    %26 = vector.load %arg1[%c6, %c0_27, %c0_28] : memref<7x32x32xf32, #tpu.memory_space<vmem>>, vector<1x32x32xf32>
    %27 = vector.shape_cast %26 : vector<1x32x32xf32> to vector<32x32xf32>
    %cst_29 = arith.constant dense<0.000000e+00> : vector<8x32xf32>
    %28 = tpu.matmul %24, %27, %cst_29 {dimension_numbers = #tpu.dot_dimension_numbers<[1], [0], [0], [1], [0, 0, 1, 1], [], []>} : vector<8x32xf32>, vector<32x32xf32>, vector<8x32xf32> -> vector<8x32xf32>
    %c56 = arith.constant 56 : index
    %c0_30 = arith.constant 0 : index
    %29 = vector.load %arg3[%c56, %c0_30] : memref<64x32xf32, #tpu.memory_space<vmem>>, vector<8x32xf32>
    tpu.vector_store %arg3[%c56, %c0_30], %28 {strides = array<i32>} : memref<64x32xf32, #tpu.memory_space<vmem>>, vector<8x32xf32>,
    %c0_31 = arith.constant 0 : index
    %c0_32 = arith.constant 0 : index
    %30 = vector.load %arg3[%c0_31, %c0_32] : memref<64x32xf32, #tpu.memory_space<vmem>>, vector<56x32xf32>
    %c0_33 = arith.constant 0 : index
    %c0_34 = arith.constant 0 : index
    %31 = vector.load %arg2[%c0_33, %c0_34] : memref<32x16xf32, #tpu.memory_space<vmem>>, vector<32x16xf32>
    %cst_35 = arith.constant dense<0.000000e+00> : vector<56x16xf32>
    %32 = tpu.matmul %30, %31, %cst_35 {dimension_numbers = #tpu.dot_dimension_numbers<[1], [0], [0], [1], [0, 0, 1, 1], [], []>} : vector<56x32xf32>, vector<32x16xf32>, vector<56x16xf32> -> vector<56x16xf32>
    %c0_36 = arith.constant 0 : index
    %c0_37 = arith.constant 0 : index
    %33 = vector.load %arg4[%c0_36, %c0_37] : memref<56x16xf32, #tpu.memory_space<vmem>>, vector<56x16xf32>
    tpu.vector_store %arg4[%c0_36, %c0_37], %32 {strides = array<i32>} : memref<56x16xf32, #tpu.memory_space<vmem>>, vector<56x16xf32>,
    return
  }
}

</mosaic_0001>

<bundles_post_ra>
// kernel: tpu_custom_call.1
= control target key start
LH: loop header
LB: loop body
LE: loop exit
PB: predicated region body
PF: predicated region fallthrough
CT: control target
= control target key end

     0   :  { %10 = vsyncpa [#allocation3], 0  ;;  %s978_s15 = smov [#allocation2]   ;;  %s1175_s0 = inlined_call_operand.vmem [shape: f32[8,32], index: 0, kind: input, shape index: {}]   ;;  %s1176_s1 = inlined_call_operand.hbm [shape: f32[7,32,32], index: 1, kind: input, shape index: {}]   ;;  %s1177_s2 = inlined_call_operand.vmem [shape: f32[32,16], index: 2, kind: input, shape index: {}]   ;;  %s1178_s3 = inlined_call_operand.vmem [shape: f32[64,32], index: 3, kind: output, shape index: {0}]   ;;  %s1179_s4 = inlined_call_operand.vmem [shape: f32[56,16], index: 4, kind: output, shape index: {1}]  }
   0x1   :  { %s18_s16 = sshll.u32 %s978_s15, 4  ;;  %s954_s19 = scalar_lea.hbm %s1176_s1, 3584  ;;  %s19_s16 = int_to_ptr.vmem [resolvable:$true] %s18_s16 }
   0x2   :  { %p955_p0 = scmp.ne.s32.totalorder %s1176_s1, %s954_s19  ;;  %p958_p1 = scmp.lt.u32.totalorder %s954_s19, %s1176_s1 }
   0x4   :  { %p960_p2 = pnand %p958_p1, %p955_p0 }
   0x6   :  { %963 = shalt.err (!%p960_p2)
}
   0x7   :  { %s964_s24 = scalar_lea.vmem %s19_s16, 3584  ;;  %p969_p4 = scmp.lt.s32.totalorder %s19_s16, %s19_s16 }
   0x8   :  { %p965_p3 = scmp.ne.s32.totalorder %s19_s16, %s964_s24  ;;  %p970_p5 = scmp.lt.s32.totalorder %s964_s24, %s964_s24 }
   0xa   :  { %p971_p6 = por %p970_p5, %p969_p4 }
   0xc   :  { %p972_p7 = pnand %p971_p6, %p965_p3 }
   0xe   :  { %975 = shalt.err (!%p972_p7)
}
   0xf   :  { %s979_s25 = smov 128   ;;  %s980_s26 = smov 8  }
  0x10   :  { %24 = dma.hbm_to_vmem [thread:$0]  %s1176_s1, 3584, %s19_s16, [#allocation3], %s979_s25, %s979_s25, %s980_s26  }
  0x11   :  { %976 = dma.done.wait [#allocation3], 3584  }
  0x12   :  { %977 = vsyncadd [#allocation3], 4294963712  ;;  %v981_v0 = vmov 0.0|0.0   ;;  %vm982_vm0 = vmmov 0   ;;  %v983_v1 = vmov 0.0   ;;  %v33_v2 = vld [vmem:[#allocation2] sm:$0xff] }
  0x13   :  { %900 = vmatprep.subr.bf16.mxu0 %v981_v0  ;;  %802 = vmatprep.mubr.msk.f32.mxu0 %vm982_vm0, %v983_v1  ;;  %v34_v3 = vld [vmem:[#allocation2 + $0x8] sm:$0xff]  ;;  %v35_v4 = vld [vmem:[#allocation2 + $0x10] sm:$0xff]  ;;  %v36_v6 = vld [vmem:[#allocation2 + $0x18] sm:$0xff]  ;;  %vm31_vm1 = vcmask 261120   ;;  %vm717_vm2 = vcmask 130048  }
  0x14   :  { %918 = vmatprep.subr.bf16.mxu1 %v981_v0  ;;  %835 = vmatprep.mubr.msk.f32.mxu1 %vm982_vm0, %v983_v1  ;;  %v901_v5 = vpack.c.bf16 %v34_v3, %v33_v2  ;;  %v30_v7 = vld [vmem:[%s1175_s0] sm:$0xff]  ;;  %v904_v8 = vpack.c.bf16 %v36_v6, %v35_v4  ;;  %v113_v10 = vld [vmem:[#allocation2 + $0x28] sm:$0xff]  ;;  %v114_v12 = vld [vmem:[#allocation2 + $0x30] sm:$0xff] }
  0x15   :  { %32 = vst.msk [vmem:[%s1178_s3] sm:$0xff] %vm31_vm1, %v30_v7  ;;  %v112_v9 = vld [vmem:[#allocation2 + $0x20] sm:$0xff]  ;;  %v115_v13 = vld [vmem:[#allocation2 + $0x38] sm:$0xff]  ;;  %v192_v16 = vld [vmem:[#allocation2 + $0x48] sm:$0xff] }
  0x16   :  { %902 = vmatpush3.bf16.msra.mxu0 %v901_v5  ;;  %v907_v11 = vpack.c.bf16 %v113_v10, %v112_v9  ;;  %v910_v14 = vpack.c.bf16 %v115_v13, %v114_v12  ;;  %v191_v15 = vld [vmem:[#allocation2 + $0x40] sm:$0xff]  ;;  %v193_v18 = vld [vmem:[#allocation2 + $0x50] sm:$0xff]  ;;  %v194_v19 = vld [vmem:[#allocation2 + $0x58] sm:$0xff] }
  0x17   :  { %903 = vmatprep.subr.bf16.mxu0 %v981_v0  ;;  %v913_v17 = vpack.c.bf16 %v192_v16, %v191_v15  ;;  %v916_v22 = vpack.c.bf16 %v194_v19, %v193_v18  ;;  %v270_v23 = vld [vmem:[#allocation2 + $0x60] sm:$0xff]  ;;  %v271_v24 = vld [vmem:[#allocation2 + $0x68] sm:$0xff]  ;;  %v272_v25 = vld [vmem:[#allocation2 + $0x70] sm:$0xff] }
  0x18   :  { %v919_v26 = vpack.c.bf16 %v271_v24, %v270_v23  ;;  %v273_v27 = vld [vmem:[#allocation2 + $0x78] sm:$0xff]  ;;  %v349_v31 = vld [vmem:[#allocation2 + $0x80] sm:$0xff]  ;;  %v350_v32 = vld [vmem:[#allocation2 + $0x88] sm:$0xff] }
  0x19   :  { %v922_v28 = vpack.c.bf16 %v273_v27, %v272_v25  ;;  %v351_v33 = vld [vmem:[#allocation2 + $0x90] sm:$0xff]  ;;  %v925_v34 = vpack.c.bf16 %v350_v32, %v349_v31  ;;  %v352_v35 = vld [vmem:[#allocation2 + $0x98] sm:$0xff]  ;;  %v428_v39 = vld [vmem:[#allocation2 + $0xa0] sm:$0xff] }
  0x1a   :  { %905 = vmatpush3.bf16.msra.mxu0 %v904_v8  ;;  %920 = vmatpush3.bf16.msra.mxu1 %v919_v26  ;;  %v928_v36 = vpack.c.bf16 %v352_v35, %v351_v33  ;;  %v429_v40 = vld [vmem:[#allocation2 + $0xa8] sm:$0xff]  ;;  %v430_v41 = vld [vmem:[#allocation2 + $0xb0] sm:$0xff]  ;;  %v431_v43 = vld [vmem:[#allocation2 + $0xb8] sm:$0xff] }
  0x1b   :  { %906 = vmatprep.subr.bf16.mxu0 %v981_v0  ;;  %921 = vmatprep.subr.bf16.mxu1 %v981_v0  ;;  %v931_v42 = vpack.c.bf16 %v429_v40, %v428_v39  ;;  %v934_v44 = vpack.c.bf16 %v431_v43, %v430_v41  ;;  %v507_v47 = vld [vmem:[#allocation2 + $0xc0] sm:$0xff]  ;;  %v508_v48 = vld [vmem:[#allocation2 + $0xc8] sm:$0xff]  ;;  %v509_v49 = vld [vmem:[#allocation2 + $0xd0] sm:$0xff] }
  0x1c   :  { %v937_v50 = vpack.c.bf16 %v508_v48, %v507_v47  ;;  %v510_v51 = vld [vmem:[#allocation2 + $0xd8] sm:$0xff]  ;;  %v592_v53 = vld [vmem:[%s1177_s2] sm:$0xff]  ;;  %v593_v54 = vld [vmem:[%s1177_s2 + $0x8] sm:$0xff] }
  0x1d   :  { %803 = vmatmul.mubr.msk.f32.vlgmr.msra.gmra.mrb[0].mxu0 %vm31_vm1, %v30_v7  ;;  %v940_v52 = vpack.c.bf16 %v510_v51, %v509_v49  ;;  %v943_v55 = vpack.c.bf16 %v593_v54, %v592_v53  ;;  %v594_v56 = vld [vmem:[%s1177_s2 + $0x10] sm:$0xff]  ;;  %v595_v57 = vld [vmem:[%s1177_s2 + $0x18] sm:$0xff]  ;;  %v585_v61 = vld [vmem:[%s1178_s3] sm:$0xff] }
  0x1e   :  { %908 = vmatpush3.bf16.msra.mxu0 %v907_v11  ;;  %813 = vmatprep.mubr.msk.f32.mxu0 %vm982_vm0, %v983_v1  ;;  %v946_v60 = vpack.c.bf16 %v595_v57, %v594_v56 }
  0x1f   :  { %909 = vmatprep.subr.bf16.mxu0 %v981_v0  ;;  %923 = vmatpush3.bf16.msra.mxu1 %v922_v28 }
  0x20   :  { %930 = vmatprep.subr.bf16.mxu1 %v981_v0 }
  0x22   :  { %911 = vmatpush3.bf16.msra.mxu0 %v910_v14 }
  0x23   :  { %912 = vmatprep.subr.bf16.mxu0 %v981_v0 }
  0xf0   :  { %v106_v20 = vpop.f32.mrb[0].mxu0 }
  0xf1   :  { %110 = vst.msk [vmem:[%s1178_s3 + $0x8] sm:$0xff] %vm31_vm1, %v106_v20  ;;  %v804_v21 = vpop.f32.mrb[1].mxu0  ;;  %814 = vmatmul.mubr.msk.f32.vlgmr.msra.gmra.mrb[2].mxu0 %vm31_vm1, %v106_v20 }
  0xf2   :  { %914 = vmatpush3.bf16.msra.mxu0 %v913_v17  ;;  %824 = vmatprep.mubr.msk.f32.mxu0 %vm982_vm0, %v983_v1 }
  0xf3   :  { %915 = vmatprep.subr.bf16.mxu0 %v981_v0 }
  0xf6   :  { %917 = vmatpush3.bf16.msra.mxu0 %v916_v22 }
  0xf7   :  { %924 = vmatprep.subr.bf16.mxu0 %v981_v0 }
  0xf8   :  { %v586_v62 = vld [vmem:[%s1178_s3 + $0x8] sm:$0xff] }
 0x1c4   :  { %v185_v29 = vpop.f32.mrb[2].mxu0 }
 0x1c5   :  { %189 = vst.msk [vmem:[%s1178_s3 + $0x10] sm:$0xff] %vm31_vm1, %v185_v29  ;;  %v815_v30 = vpop.f32.mrb[3].mxu0  ;;  %825 = vmatmul.mubr.msk.f32.vlgmr.msra.gmra.mrb[4].mxu0 %vm31_vm1, %v185_v29 }
 0x1c6   :  { %846 = vmatprep.mubr.msk.f32.mxu0 %vm982_vm0, %v983_v1  ;;  %926 = vmatpush3.bf16.msra.mxu0 %v925_v34 }
 0x1c7   :  { %927 = vmatprep.subr.bf16.mxu0 %v981_v0 }
 0x1ca   :  { %929 = vmatpush3.bf16.msra.mxu0 %v928_v36 }
 0x1cb   :  { %936 = vmatprep.subr.bf16.mxu0 %v981_v0 }
 0x1cc   :  { %v587_v63 = vld [vmem:[%s1178_s3 + $0x10] sm:$0xff] }
 0x298   :  { %v264_v37 = vpop.f32.mrb[4].mxu0 }
 0x299   :  { %268 = vst.msk [vmem:[%s1178_s3 + $0x18] sm:$0xff] %vm31_vm1, %v264_v37  ;;  %v826_v38 = vpop.f32.mrb[5].mxu0  ;;  %836 = vmatmul.mubr.msk.f32.vlgmr.msra.gmra.mrb[0].mxu1 %vm31_vm1, %v264_v37 }
 0x29a   :  { %857 = vmatprep.mubr.msk.f32.mxu1 %vm982_vm0, %v983_v1  ;;  %932 = vmatpush3.bf16.msra.mxu1 %v931_v42 }
 0x29b   :  { %933 = vmatprep.subr.bf16.mxu1 %v981_v0 }
 0x29e   :  { %935 = vmatpush3.bf16.msra.mxu1 %v934_v44 }
 0x29f   :  { %942 = vmatprep.subr.bf16.mxu1 %v981_v0 }
 0x36c   :  { %v343_v45 = vpop.f32.mrb[0].mxu1 }
 0x36d   :  { %347 = vst.msk [vmem:[%s1178_s3 + $0x20] sm:$0xff] %vm31_vm1, %v343_v45  ;;  %v837_v46 = vpop.f32.mrb[1].mxu1  ;;  %847 = vmatmul.mubr.msk.f32.vlgmr.msra.gmra.mrb[6].mxu0 %vm31_vm1, %v343_v45 }
 0x36e   :  { %868 = vmatprep.mubr.msk.f32.mxu0 %vm982_vm0, %v983_v1  ;;  %938 = vmatpush3.bf16.msra.mxu0 %v937_v50 }
 0x36f   :  { %939 = vmatprep.subr.bf16.mxu0 %v981_v0 }
 0x372   :  { %941 = vmatpush3.bf16.msra.mxu0 %v940_v52 }
 0x374   :  { %v589_v2 = vld [vmem:[%s1178_s3 + $0x20] sm:$0xff] }
 0x440   :  { %v422_v58 = vpop.f32.mrb[6].mxu0 }
 0x441   :  { %426 = vst.msk [vmem:[%s1178_s3 + $0x28] sm:$0xff] %vm31_vm1, %v422_v58  ;;  %v848_v59 = vpop.f32.mrb[7].mxu0  ;;  %858 = vmatmul.mubr.msk.f32.vlgmr.msra.gmra.mrb[2].mxu1 %vm31_vm1, %v422_v58 }
 0x442   :  { %944 = vmatpush3.bf16.msra.mxu1 %v943_v55  ;;  %879 = vmatprep.mubr.msk.f32.mxu1 %vm982_vm0, %v983_v1 }
 0x443   :  { %945 = vmatprep.subr.bf16.mxu1 %v981_v0  ;;  %v588_v0 = vld [vmem:[%s1178_s3 + $0x18] sm:$0xff] }
 0x446   :  { %947 = vmatpush3.bf16.msra.mxu1 %v946_v60 }
 0x448   :  { %v590_v3 = vld [vmem:[%s1178_s3 + $0x28] sm:$0xff] }
 0x449   :  { %880 = vmatmul.mubr.msk.f32.vlgmr.msra.gmra.mrb[4].mxu1 %vm31_vm1, %v585_v61 }
 0x44a   :  { %882 = vmatprep.mubr.msk.f32.mxu1 %vm982_vm0, %v983_v1 }
 0x44d   :  { %883 = vmatmul.mubr.msk.f32.gmra.mrb[6].mxu1 %vm31_vm1, %v586_v62 }
 0x44e   :  { %885 = vmatprep.mubr.msk.f32.mxu1 %vm982_vm0, %v983_v1 }
 0x451   :  { %886 = vmatmul.mubr.msk.f32.gmra.mrb[8].mxu1 %vm31_vm1, %v587_v63 }
 0x452   :  { %888 = vmatprep.mubr.msk.f32.mxu1 %vm982_vm0, %v983_v1 }
 0x455   :  { %889 = vmatmul.mubr.msk.f32.gmra.mrb[10].mxu1 %vm31_vm1, %v588_v0 }
 0x456   :  { %891 = vmatprep.mubr.msk.f32.mxu1 %vm982_vm0, %v983_v1 }
 0x459   :  { %892 = vmatmul.mubr.msk.f32.gmra.mrb[12].mxu1 %vm31_vm1, %v589_v2 }
 0x45a   :  { %894 = vmatprep.mubr.msk.f32.mxu1 %vm982_vm0, %v983_v1 }
 0x45d   :  { %895 = vmatmul.mubr.msk.f32.gmra.mrb[14].mxu1 %vm31_vm1, %v590_v3 }
 0x45e   :  { %897 = vmatprep.mubr.msk.f32.mxu1 %vm982_vm0, %v983_v1 }
 0x514   :  { %v501_v4 = vpop.f32.mrb[2].mxu1 }
 0x515   :  { %505 = vst.msk [vmem:[%s1178_s3 + $0x30] sm:$0xff] %vm31_vm1, %v501_v4  ;;  %v859_v5 = vpop.f32.mrb[3].mxu1  ;;  %869 = vmatmul.mubr.msk.f32.vlgmr.msra.gmra.mrb[8].mxu0 %vm31_vm1, %v501_v4 }
 0x51c   :  { %v683_v6 = vpop.f32.mrb[4].mxu1  ;;  %v591_v7 = vld [vmem:[%s1178_s3 + $0x30] sm:$0xff] }
 0x51d   :  { %718 = vst.msk [vmem:[%s1179_s4] sm:$0xff] %vm717_vm2, %v683_v6  ;;  %898 = vmatmul.mubr.msk.f32.gmra.mrb[16].mxu1 %vm31_vm1, %v591_v7  ;;  %v881_v1 = vpop.f32.mrb[5].mxu1 }
 0x520   :  { %v688_v8 = vpop.f32.mrb[6].mxu1 }
 0x521   :  { %719 = vst.msk [vmem:[%s1179_s4 + $0x8] sm:$0xff] %vm717_vm2, %v688_v8  ;;  %v884_v9 = vpop.f32.mrb[7].mxu1 }
 0x524   :  { %v693_v10 = vpop.f32.mrb[8].mxu1 }
 0x525   :  { %720 = vst.msk [vmem:[%s1179_s4 + $0x10] sm:$0xff] %vm717_vm2, %v693_v10  ;;  %v887_v11 = vpop.f32.mrb[9].mxu1 }
 0x528   :  { %v698_v12 = vpop.f32.mrb[10].mxu1 }
 0x529   :  { %721 = vst.msk [vmem:[%s1179_s4 + $0x18] sm:$0xff] %vm717_vm2, %v698_v12  ;;  %v890_v13 = vpop.f32.mrb[11].mxu1 }
 0x52c   :  { %v703_v14 = vpop.f32.mrb[12].mxu1 }
 0x52d   :  { %722 = vst.msk [vmem:[%s1179_s4 + $0x20] sm:$0xff] %vm717_vm2, %v703_v14  ;;  %v893_v15 = vpop.f32.mrb[13].mxu1 }
 0x530   :  { %v708_v16 = vpop.f32.mrb[14].mxu1 }
 0x531   :  { %723 = vst.msk [vmem:[%s1179_s4 + $0x28] sm:$0xff] %vm717_vm2, %v708_v16  ;;  %v896_v17 = vpop.f32.mrb[15].mxu1 }
 0x5e8   :  { %v580_v18 = vpop.f32.mrb[8].mxu0 }
 0x5e9   :  { %584 = vst.msk [vmem:[%s1178_s3 + $0x38] sm:$0xff] %vm31_vm1, %v580_v18  ;;  %v870_v19 = vpop.f32.mrb[9].mxu0 }
 0x5f0   :  { %v713_v20 = vpop.f32.mrb[16].mxu1 }
 0x5f1   :  { %724 = vst.msk [vmem:[%s1179_s4 + $0x30] sm:$0xff] %vm717_vm2, %v713_v20  ;;  %v899_v21 = vpop.f32.mrb[17].mxu1 }
 0x5f2   :  { %733 = vsyncpa [#allocation3], 1 }

</bundles_post_ra>
